<compile_context>
chip_gen: v7x
topology: tpu7x:2x2x1
jax: 0.10.0
libtpu: 0.0.40
codegen_flags: <defaults>
</compile_context>

<pallas_src>
import math

import jax
import jax.numpy as jnp
from jax.experimental import pallas as pl
from jax.experimental.pallas import tpu as pltpu


def hyperprior_lstm_kernel(scalars_ref,   # SMEM (4,): [init_var, softweight, h_prev, c_prev]
                           x_ref,         # VMEM (B*K, Z)
                           g_ref,         # VMEM (G, Z)
                           w_ref,         # VMEM (4, 2Z+2): [W_ih_x | W_ih_g | W_hh | b_ih+b_hh]
                           out_ref):      # VMEM (1, 8): [net, h_new, c_new, 0, ...]
    Z = x_ref.shape[1]

    # mean_x = input_x.mean(0).mean(0)  (uniform weights -> mean over flattened rows)
    mean_x = jnp.mean(x_ref[...], axis=0, keepdims=True)        # (1, Z)
    # mean_grad = grad[0].mean(0)
    mean_g = jnp.mean(g_ref[...], axis=0, keepdims=True)        # (1, Z)

    w = w_ref[...]                                               # (4, 2Z+2)
    h_prev = scalars_ref[2]
    c_prev = scalars_ref[3]

    # gates = W_ih @ cat(mean_x, mean_grad) + W_hh @ h + (b_ih + b_hh)
    # Fold the two input halves element-wise first so only ONE cross-lane
    # reduction (the only nontrivial XLU work in this kernel) is needed.
    prod = w[:, :Z] * mean_x + w[:, Z:2 * Z] * mean_g            # (4, Z)  VPU
    gates = (jnp.sum(prod, axis=1, keepdims=True)                # (4, 1)  single XLU reduce
             + w[:, 2 * Z:2 * Z + 1] * h_prev                    # W_hh * h
             + w[:, 2 * Z + 1:2 * Z + 2])                        # b_ih + b_hh

    # Whole-vector nonlinearities (2 full-vreg EUP passes), then cheap slices.
    sig = jax.nn.sigmoid(gates)                                  # (4, 1)
    th = jnp.tanh(gates)                                         # (4, 1)
    i_g = sig[0:1, :]
    f_g = sig[1:2, :]
    g_g = th[2:3, :]
    o_g = sig[3:4, :]

    c_new = f_g * c_prev + i_g * g_g                             # (1, 1)
    h_new = o_g * jnp.tanh(c_new)                                # (1, 1)
    # net = init_vars[step_idx] + softweight * lstm_out
    net = scalars_ref[0] + scalars_ref[1] * h_new                # (1, 1)

    # Single merged output store: [net, h_new, c_new, 0, 0, 0, 0, 0]
    lane = jax.lax.broadcasted_iota(jnp.int32, (1, 8), 1)
    out_ref[...] = jnp.where(lane == 0, net,
                   jnp.where(lane == 1, h_new,
                   jnp.where(lane == 2, c_new, 0.0)))


@jax.jit
def hyperprior_basestep_lstm(input_x, grad0, step_idx, params, hidden):
    """Forward pass. Returns (net, (h_new, c_new)), each shaped (1, 1, 1)."""
    B, K, Z = input_x.shape
    x2d = input_x.reshape(B * K, Z).astype(jnp.float32)
    g2d = grad0.astype(jnp.float32)

    h_prev, c_prev = hidden
    init_var = params["init_vars"][step_idx]        # dynamic index -> no recompile per step
    scalars = jnp.stack([
        init_var.reshape(()),
        params["softweight"].reshape(()),
        h_prev.reshape(()),
        c_prev.reshape(()),
    ]).astype(jnp.float32)                           # (4,)

    # Pack all LSTM parameters into one (4, 2Z+2) tensor:
    #   columns [0:2Z)      -> W_ih  (gate order i, f, g, o)
    #   column  2Z          -> W_hh
    #   column  2Z+1        -> b_ih + b_hh
    w_ext = jnp.concatenate(
        [params["w_ih"].astype(jnp.float32),
         params["w_hh"].reshape(4, 1).astype(jnp.float32),
         (params["b_ih"] + params["b_hh"]).reshape(4, 1).astype(jnp.float32)],
        axis=1)                                      # (4, 2Z+2)

    vmem = pl.BlockSpec(memory_space=pltpu.MemorySpace.VMEM)
    smem = pl.BlockSpec(memory_space=pltpu.MemorySpace.SMEM)

    out = pl.pallas_call(
        hyperprior_lstm_kernel,
        out_shape=jax.ShapeDtypeStruct((1, 8), jnp.float32),
        in_specs=[smem, vmem, vmem, vmem],
        out_specs=vmem,
    )(scalars, x2d, g2d, w_ext)

    net = out[0, 0].reshape(1, 1, 1)
    h_new = out[0, 1].reshape(1, 1, 1)
    c_new = out[0, 2].reshape(1, 1, 1)
    return net, (h_new, c_new)


def reference_forward(input_x, grad0, step_idx, params, hidden):
    """Pure-JAX replica of the PyTorch forward (for validation)."""
    mean_x = input_x.mean(axis=0).mean(axis=0)                   # (Z,)
    mean_g = grad0.mean(axis=0)                                  # (Z,)
    net = jnp.concatenate([mean_x, mean_g], axis=0)              # (2Z,)
    h_prev, c_prev = hidden
    h0 = h_prev.reshape(())
    c0 = c_prev.reshape(())
    gates = (params["w_ih"] @ net + params["b_ih"]
             + params["w_hh"][:, 0] * h0 + params["b_hh"])       # (4,)
    i = jax.nn.sigmoid(gates[0])
    f = jax.nn.sigmoid(gates[1])
    g = jnp.tanh(gates[2])
    o = jax.nn.sigmoid(gates[3])
    c_new = f * c0 + i * g
    h_new = o * jnp.tanh(c_new)
    out = params["init_vars"][step_idx] + params["softweight"] * h_new
    return out.reshape(1, 1, 1), (h_new.reshape(1, 1, 1), c_new.reshape(1, 1, 1))


if __name__ == "__main__":
    # Module hyper-parameters (synthetic, deterministic).
    z_dim = 16
    update_step = 5
    update_lr = 0.01
    softweight = 0.1          # args.hyperprior_combination_softweight
    hidden_dim = 1

    # Deterministic parameter init (PyTorch LSTM default: U(-1/sqrt(H), 1/sqrt(H))).
    key = jax.random.PRNGKey(0)
    k_wih, k_whh, k_bih, k_bhh, k_x, k_g = jax.random.split(key, 6)
    bound = 1.0 / math.sqrt(hidden_dim)
    params = {
        "init_vars": jnp.full((update_step,), update_lr, dtype=jnp.float32),
        "softweight": jnp.float32(softweight),
        "w_ih": jax.random.uniform(k_wih, (4 * hidden_dim, 2 * z_dim),
                                   minval=-bound, maxval=bound, dtype=jnp.float32),
        "w_hh": jax.random.uniform(k_whh, (4 * hidden_dim, hidden_dim),
                                   minval=-bound, maxval=bound, dtype=jnp.float32),
        "b_ih": jax.random.uniform(k_bih, (4 * hidden_dim,),
                                   minval=-bound, maxval=bound, dtype=jnp.float32),
        "b_hh": jax.random.uniform(k_bhh, (4 * hidden_dim,),
                                   minval=-bound, maxval=bound, dtype=jnp.float32),
    }

    # init_hidden(): zeros of shape (1, 1, hidden_dim)
    hidden = (jnp.zeros((1, 1, hidden_dim), jnp.float32),
              jnp.zeros((1, 1, hidden_dim), jnp.float32))
    ref_hidden = hidden

    # Example inputs: input_x is (B, K, z_dim), grad is a list whose first
    # element is (G, z_dim), step_idx selects one of the update_step params.
    input_x = jax.random.normal(k_x, (2, 4, z_dim), dtype=jnp.float32)
    grad = [jax.random.normal(k_g, (8, z_dim), dtype=jnp.float32)]

    # Run three consecutive steps through the SAME compiled executable
    # (step_idx is a traced argument), threading the hidden state.
    for step_idx in range(3):
        out, hidden = hyperprior_basestep_lstm(input_x, grad[0], step_idx,
                                               params, hidden)
        out = jax.block_until_ready(out)
        hidden = jax.block_until_ready(hidden)

        ref_out, ref_hidden = reference_forward(input_x, grad[0], step_idx,
                                                params, ref_hidden)

        assert out.shape == (1, 1, 1)
        assert jnp.allclose(out, ref_out, rtol=1e-5, atol=1e-5)
        assert jnp.allclose(hidden[0], ref_hidden[0], rtol=1e-5, atol=1e-5)
        assert jnp.allclose(hidden[1], ref_hidden[1], rtol=1e-5, atol=1e-5)

    print("KERNEL_OK")
</pallas_src>

<mosaic_0001>
module attributes {stable_mosaic.version = 11 : i64} {
  func.func @hyperprior_lstm_kernel(%arg0: memref<4xf32, #tpu.memory_space<smem>>, %arg1: memref<8x16xf32, #tpu.memory_space<vmem>>, %arg2: memref<8x16xf32, #tpu.memory_space<vmem>>, %arg3: memref<4x34xf32, #tpu.memory_space<vmem>>, %arg4: memref<1x8xf32, #tpu.memory_space<vmem>>) attributes {dimension_semantics = [], scalar_prefetch = 0 : i64, scratch_operands = 0 : i64, tpu.core_type = #tpu.core_type<tc>} {
    %c0 = arith.constant 0 : index
    %c0_0 = arith.constant 0 : index
    %0 = vector.load %arg1[%c0, %c0_0] : memref<8x16xf32, #tpu.memory_space<vmem>>, vector<8x16xf32>
    %cst = arith.constant dense<0.000000e+00> : vector<16xf32>
    %1 = vector.multi_reduction <add>, %0, %cst [0] : vector<8x16xf32> to vector<16xf32>
    %2 = vector.shape_cast %1 : vector<16xf32> to vector<1x16xf32>
    %cst_1 = arith.constant 8.000000e+00 : f32
    %3 = vector.broadcast %cst_1 : f32 to vector<1x16xf32>
    %4 = arith.divf %2, %3 : vector<1x16xf32>
    %c0_2 = arith.constant 0 : index
    %c0_3 = arith.constant 0 : index
    %5 = vector.load %arg2[%c0_2, %c0_3] : memref<8x16xf32, #tpu.memory_space<vmem>>, vector<8x16xf32>
    %cst_4 = arith.constant dense<0.000000e+00> : vector<16xf32>
    %6 = vector.multi_reduction <add>, %5, %cst_4 [0] : vector<8x16xf32> to vector<16xf32>
    %7 = vector.shape_cast %6 : vector<16xf32> to vector<1x16xf32>
    %cst_5 = arith.constant 8.000000e+00 : f32
    %8 = vector.broadcast %cst_5 : f32 to vector<1x16xf32>
    %9 = arith.divf %7, %8 : vector<1x16xf32>
    %c0_6 = arith.constant 0 : index
    %c0_7 = arith.constant 0 : index
    %10 = vector.load %arg3[%c0_6, %c0_7] : memref<4x34xf32, #tpu.memory_space<vmem>>, vector<4x34xf32>
    %c2 = arith.constant 2 : index
    %11 = memref.load %arg0[%c2] : memref<4xf32, #tpu.memory_space<smem>>
    %c3 = arith.constant 3 : index
    %12 = memref.load %arg0[%c3] : memref<4xf32, #tpu.memory_space<smem>>
    %13 = vector.extract_strided_slice %10 {offsets = [0, 0], sizes = [4, 16], strides = [1, 1]} : vector<4x34xf32> to vector<4x16xf32>
    %14 = vector.broadcast %4 : vector<1x16xf32> to vector<4x16xf32>
    %15 = arith.mulf %13, %14 : vector<4x16xf32>
    %16 = vector.extract_strided_slice %10 {offsets = [0, 16], sizes = [4, 16], strides = [1, 1]} : vector<4x34xf32> to vector<4x16xf32>
    %17 = vector.broadcast %9 : vector<1x16xf32> to vector<4x16xf32>
    %18 = arith.mulf %16, %17 : vector<4x16xf32>
    %19 = arith.addf %15, %18 : vector<4x16xf32>
    %cst_8 = arith.constant dense<0.000000e+00> : vector<4xf32>
    %20 = vector.multi_reduction <add>, %19, %cst_8 [1] : vector<4x16xf32> to vector<4xf32>
    %21 = vector.shape_cast %20 : vector<4xf32> to vector<4x1xf32>
    %22 = vector.extract_strided_slice %10 {offsets = [0, 32], sizes = [4, 1], strides = [1, 1]} : vector<4x34xf32> to vector<4x1xf32>
    %23 = vector.broadcast %11 : f32 to vector<4x1xf32>
    %24 = arith.mulf %22, %23 : vector<4x1xf32>
    %25 = arith.addf %21, %24 : vector<4x1xf32>
    %26 = vector.extract_strided_slice %10 {offsets = [0, 33], sizes = [4, 1], strides = [1, 1]} : vector<4x34xf32> to vector<4x1xf32>
    %27 = arith.addf %25, %26 : vector<4x1xf32>
    %28 = arith.negf %27 : vector<4x1xf32>
    %29 = math.exp %28 : vector<4x1xf32>
    %cst_9 = arith.constant 1.000000e+00 : f32
    %30 = vector.broadcast %cst_9 : f32 to vector<4x1xf32>
    %31 = arith.addf %30, %29 : vector<4x1xf32>
    %32 = arith.divf %30, %31 : vector<4x1xf32>
    %33 = math.tanh %27 : vector<4x1xf32>
    %34 = vector.extract_strided_slice %32 {offsets = [0, 0], sizes = [1, 1], strides = [1, 1]} : vector<4x1xf32> to vector<1x1xf32>
    %35 = vector.extract_strided_slice %32 {offsets = [1, 0], sizes = [1, 1], strides = [1, 1]} : vector<4x1xf32> to vector<1x1xf32>
    %36 = vector.extract_strided_slice %33 {offsets = [2, 0], sizes = [1, 1], strides = [1, 1]} : vector<4x1xf32> to vector<1x1xf32>
    %37 = vector.extract_strided_slice %32 {offsets = [3, 0], sizes = [1, 1], strides = [1, 1]} : vector<4x1xf32> to vector<1x1xf32>
    %38 = vector.broadcast %12 : f32 to vector<1x1xf32>
    %39 = arith.mulf %35, %38 : vector<1x1xf32>
    %40 = arith.mulf %34, %36 : vector<1x1xf32>
    %41 = arith.addf %39, %40 : vector<1x1xf32>
    %42 = math.tanh %41 : vector<1x1xf32>
    %43 = arith.mulf %37, %42 : vector<1x1xf32>
    %c0_10 = arith.constant 0 : index
    %44 = memref.load %arg0[%c0_10] : memref<4xf32, #tpu.memory_space<smem>>
    %c1 = arith.constant 1 : index
    %45 = memref.load %arg0[%c1] : memref<4xf32, #tpu.memory_space<smem>>
    %46 = vector.broadcast %45 : f32 to vector<1x1xf32>
    %47 = arith.mulf %46, %43 : vector<1x1xf32>
    %48 = vector.broadcast %44 : f32 to vector<1x1xf32>
    %49 = arith.addf %48, %47 : vector<1x1xf32>
    %50 = tpu.iota {dimensions = array<i32: 1>} : vector<1x8xi32>
    %c0_i32 = arith.constant 0 : i32
    %51 = vector.broadcast %c0_i32 : i32 to vector<1x8xi32>
    %52 = arith.cmpi eq, %50, %51 : vector<1x8xi32>
    %c1_i32 = arith.constant 1 : i32
    %53 = vector.broadcast %c1_i32 : i32 to vector<1x8xi32>
    %54 = arith.cmpi eq, %50, %53 : vector<1x8xi32>
    %c2_i32 = arith.constant 2 : i32
    %55 = vector.broadcast %c2_i32 : i32 to vector<1x8xi32>
    %56 = arith.cmpi eq, %50, %55 : vector<1x8xi32>
    %cst_11 = arith.constant 0.000000e+00 : f32
    %57 = vector.shape_cast %41 : vector<1x1xf32> to vector<1x1xf32>
    %58 = vector.broadcast %57 : vector<1x1xf32> to vector<1x8xf32>
    %59 = vector.broadcast %cst_11 : f32 to vector<1x8xf32>
    %60 = arith.select %56, %58, %59 : vector<1x8xi1>, vector<1x8xf32>
    %61 = vector.shape_cast %43 : vector<1x1xf32> to vector<1x1xf32>
    %62 = vector.broadcast %61 : vector<1x1xf32> to vector<1x8xf32>
    %63 = arith.select %54, %62, %60 : vector<1x8xi1>, vector<1x8xf32>
    %64 = vector.shape_cast %49 : vector<1x1xf32> to vector<1x1xf32>
    %65 = vector.broadcast %64 : vector<1x1xf32> to vector<1x8xf32>
    %66 = arith.select %52, %65, %63 : vector<1x8xi1>, vector<1x8xf32>
    %c0_12 = arith.constant 0 : index
    %c0_13 = arith.constant 0 : index
    %67 = vector.load %arg4[%c0_12, %c0_13] : memref<1x8xf32, #tpu.memory_space<vmem>>, vector<1x8xf32>
    tpu.vector_store %arg4[%c0_12, %c0_13], %66 {strides = array<i32>} : memref<1x8xf32, #tpu.memory_space<vmem>>, vector<1x8xf32>,
    return
  }
}

</mosaic_0001>

<bundles_post_ra>
// kernel: hyperprior_basestep_lstm.1
= control target key start
LH: loop header
LB: loop body
LE: loop exit
PB: predicated region body
PF: predicated region fallthrough
CT: control target
= control target key end

     0   :  { %9 = vsyncpa [#allocation3], 0  ;;  %s216_s0 = inlined_call_operand.vmem [shape: f32[4], index: 0, kind: input, shape index: {}]   ;;  %s217_s1 = inlined_call_operand.vmem [shape: f32[8,16], index: 1, kind: input, shape index: {}]   ;;  %s218_s2 = inlined_call_operand.vmem [shape: f32[8,16], index: 2, kind: input, shape index: {}]   ;;  %s219_s3 = inlined_call_operand.vmem [shape: f32[4,34], index: 3, kind: input, shape index: {}]   ;;  %s220_s4 = inlined_call_operand.vmem [shape: f32[1,8], index: 4, kind: output, shape index: {}]  }
   0x1   :  { %s16_s17 = sshll.u32 %s216_s0, 4  ;;  %s17_s17 = int_to_ptr.vmem [resolvable:$true] %s16_s17 }
   0x2   :  { %s155_s18 = scalar_lea.vmem %s17_s17, 16  ;;  %p160_p1 = scmp.lt.s32.totalorder %s17_s17, %s17_s17 }
   0x3   :  { %p156_p0 = scmp.ne.s32.totalorder %s17_s17, %s155_s18  ;;  %p161_p2 = scmp.lt.s32.totalorder %s155_s18, %s155_s18 }
   0x5   :  { %p162_p3 = por %p161_p2, %p160_p1 }
   0x7   :  { %p163_p4 = pnand %p162_p3, %p156_p0 }
   0x9   :  { %166 = shalt.err (!%p163_p4)
}
   0xa   :  { %s169_s19 = smov [#allocation2]  }
   0xb   :  { %19 = dma.vmem_to_smem %s17_s17, 16, %s169_s19, [#allocation3]  }
   0xc   :  { %167 = dma.done.wait [#allocation3], 16  }
   0xd   :  { %168 = vsyncadd [#allocation3], 4294967280 }
   0xe   :  { %29 = sfence }
   0xf   :  { %vm31_vm0 = vcmask 130048   ;;  %v41_v0 = vld [vmem:[%s218_s2] sm:$0xff]  ;;  %s170_s0 = smov 16   ;;  %s171_s24 = smov 112   ;;  %vm64_vm1 = vcmask 125952   ;;  %v173_v25 = vmov 32   ;;  %v104_v50 = vlaneseq }
  0x10   :  { %v42_v1 = vsel %vm31_vm0, %v41_v0, 0.0  ;;  %v50_v9 = vld [vmem:[%s219_s3] sm:$0xf]  ;;  %s172_s3 = smov 127   ;;  %146 = vset.pattern.permute.xlu0 %v173_v25  ;;  %s138_s26 = sld [smem:[#allocation2 + $0x3]]  ;;  %vm130_vm5 = vcmask 60419  }
  0x11   :  { %v43_v2 = vrot.slane %v42_v1, 4  ;;  %v30_v12 = vld [vmem:[%s217_s1] sm:$0xff]  ;;  %s137_s1 = sld [smem:[#allocation2 + $0x2]]  ;;  %s140_s27 = sld [smem:[#allocation2 + $0x1]]  ;;  %v105_v51 = vand.u32 127, %v104_v50 }
  0x12   :  { %v32_v13 = vsel %vm31_vm0, %v30_v12, 0.0  ;;  %s98_s28 = sld [smem:[#allocation2]] }
  0x13   :  { %v44_v3 = vadd.f32 %v43_v2, %v42_v1  ;;  %v33_v14 = vrot.slane %v32_v13, 4  ;;  %vm108_vm2 = vcmp.eq.s32.totalorder %v105_v51, 2  ;;  %vm107_vm3 = vcmp.eq.s32.totalorder %v105_v51, 1 }
  0x14   :  { %vm106_vm4 = vcmp.eq.s32.totalorder %v105_v51, 0 }
  0x15   :  { %v45_v4 = vrot.slane %v44_v3, 2  ;;  %v34_v15 = vadd.f32 %v33_v14, %v32_v13 }
  0x16   :  { %v83_v38 = vstv %s138_s26 }
  0x17   :  { %v46_v5 = vadd.f32 %v45_v4, %v44_v3  ;;  %v35_v16 = vrot.slane %v34_v15, 2  ;;  %v68_v26 = vstv %s137_s1  ;;  %v100_v45 = vstv %s140_s27 }
  0x18   :  { %v69_v27 = vmul.f32 %v68_v26, %v50_v9  ;;  %v102_v47 = vstv %s98_s28 }
  0x19   :  { %v47_v6 = vrot.slane %v46_v5, 1  ;;  %v36_v17 = vadd.f32 %v35_v16, %v34_v15 }
  0x1b   :  { %v48_v7 = vadd.f32 %v47_v6, %v46_v5  ;;  %v37_v18 = vrot.slane %v36_v17, 1 }
  0x1d   :  { %v49_v8 = vmul.f32 0.125, %v48_v7  ;;  %v38_v19 = vadd.f32 %v37_v18, %v36_v17 }
  0x1f   :  { %55 = vrot.lane.b32.xlu0 %v49_v8, %s170_s0  ;;  %v40_v20 = vmul.f32 0.125, %v38_v19 }
  0x21   :  { %v53_v21 = vmul.f32 %v50_v9, %v40_v20 }
  0x91   :  { %v56_v10 = vpop.permute.xlu0 %55 }
  0x92   :  { %v58_v11 = vmul.f32 %v56_v10, %v50_v9 }
  0x94   :  { %60 = vrot.lane.b32.xlu0 %v58_v11, %s171_s24 }
 0x106   :  { %v61_v22 = vpop.permute.xlu0 %60 }
 0x107   :  { %v63_v23 = vadd.f32 %v61_v22, %v53_v21 }
 0x109   :  { %v65_v24 = vsel %vm64_vm1, %v63_v23, 0.0 }
 0x10a   :  { %66 = vadd.xlane.f32.xlu1 %v65_v24 }
 0x11b   :  { %72 = vrot.lane.b32.xlu1 %v50_v9, %s172_s3 }
 0x197   :  { %v67_v28 = vpop.xlane.xlu1 %66 }
 0x198   :  { %v70_v29 = vadd.f32 %v69_v27, %v67_v28 }
 0x19b   :  { %v73_v30 = vpop.permute.xlu1 %72 }
 0x19c   :  { %v75_v31 = vadd.f32 %v73_v30, %v70_v29 }
 0x19e   :  { %v139_v32 = vmul.f32 -1.442695, %v75_v31 }
 0x1a0   :  { %147 = vpow2.f32 %v139_v32 }
 0x1a1   :  { %149 = vtanh.f32 %v75_v31 }
 0x1aa   :  { %v148_v33 = vpop.eup %147 }
 0x1ab   :  { %v79_v34 = vadd.f32 1.0, %v148_v33  ;;  %v150_v35 = vpop.eup %149 }
 0x1ac   :  { %v86_v36 = vrot.slane %v150_v35, 2 }
 0x1ad   :  { %151 = vrcp.f32 %v79_v34 }
 0x1b7   :  { %v152_v37 = vpop.eup %151 }
 0x1b8   :  { %v88_v39 = vmul.f32 %v152_v37, %v86_v36  ;;  %v84_v40 = vmul.f32 %v152_v37, %v83_v38 }
 0x1ba   :  { %v90_v41 = vrot.slane %v88_v39, 7 }
 0x1bc   :  { %v92_v42 = vadd.f32 %v90_v41, %v84_v40 }
 0x1be   :  { %111 = vperm.xlu0 %146, %v92_v42   ;;  %153 = vtanh.f32 %v92_v42 }
 0x1c8   :  { %v154_v43 = vpop.eup %153 }
 0x1c9   :  { %v95_v44 = vrot.slane %v154_v43, 6 }
 0x1cb   :  { %v97_v46 = vmul.f32 %v152_v37, %v95_v44 }
 0x1cd   :  { %117 = vperm.xlu0 %146, %v97_v46   ;;  %v101_v48 = vmul.f32 %v100_v45, %v97_v46 }
 0x1cf   :  { %v103_v49 = vadd.f32 %v102_v47, %v101_v48 }
 0x1d1   :  { %126 = vperm.xlu0 %146, %v103_v49  }
 0x23d   :  { %v112_v52 = vpop.permute.xlu0 %111 }
 0x23e   :  { %v114_v53 = vsel %vm108_vm2, %v112_v52, 0.0 }
 0x23f   :  { %v121_v55 = vrot.slane %v114_v53, 6 }
 0x24c   :  { %v118_v54 = vpop.permute.xlu0 %117 }
 0x24d   :  { %v123_v56 = vsel %vm107_vm3, %v118_v54, %v121_v55 }
 0x250   :  { %v127_v57 = vpop.permute.xlu0 %126 }
 0x251   :  { %v129_v58 = vsel %vm106_vm4, %v127_v57, %v123_v56 }
 0x252   :  { %131 = vst.msk [vmem:[%s220_s4 - $0x3] sm:$0x8] %vm130_vm5, %v129_v58 }
 0x253   :  { %136 = vsyncpa [#allocation3], 1 }

</bundles_post_ra>
